<compile_context>
chip_gen: v5e
topology: v5e:2x2
jax: 0.10.0
libtpu: 0.0.40
codegen_flags: <defaults>
</compile_context>

<pallas_src>
import functools

import jax
import jax.numpy as jnp
from jax import lax
from jax.experimental import pallas as pl
from jax.experimental.pallas import tpu as pltpu

LANE = 128


def _round_up(x, m):
    return ((x + m - 1) // m) * m


def _cdiv(a, b):
    return -(-a // b)


def _choose_tiles(B, C, HW, tm_max, *, target_step_bytes=512 << 10,
                  min_step_bytes=128 << 10):
    """Pick the pixel tile TM (lanes) and batch tile Bb for the grid."""
    hw128 = _round_up(HW, LANE)
    px_bytes = C * 4                      # f32 feature-map bytes per pixel column

    tm_max = max(LANE, (tm_max // LANE) * LANE)
    TM = min(tm_max, hw128)

    def points(tm, bb):
        return _cdiv(B, bb) * _cdiv(hw128, tm)

    # Keep >= 4 grid points (>= 2 per v7x TensorCore) as long as each grid
    # step still reads >= min_step_bytes of feature map.
    while TM > LANE and points(TM, 1) < 4 and \
            ((TM // 2) // LANE) * LANE * px_bytes >= min_step_bytes:
        TM = max(LANE, ((TM // 2) // LANE) * LANE)

    # Small feature maps: a single tile already spans all pixels but reads far
    # less than target_step_bytes -> stack batch rows into the block so the
    # fixed per-step pipeline cost stays hidden.
    Bb = 1
    if TM >= hw128 and TM * px_bytes < target_step_bytes and B > 1:
        Bb = min(B, max(1, target_step_bytes // (TM * px_bytes)))
        # Don't starve the grid if splitting batch still gives big-enough steps.
        while Bb > 1 and points(TM, Bb) < 4 and \
                _cdiv(Bb, 2) * TM * px_bytes >= min_step_bytes:
            Bb = _cdiv(Bb, 2)
    return TM, Bb


def _choose_strip(TM, *, max_strip=512):
    """Largest multiple of 128 that divides TM and is <= max_strip."""
    k = TM // LANE
    for d in range(min(k, max_strip // LANE), 0, -1):
        if k % d == 0:
            return d * LANE
    return LANE


# -----------------------------------------------------------------------------
# Pallas kernel: chain of 1x1 convs, channels-on-sublanes / pixels-on-lanes.
# -----------------------------------------------------------------------------
def _fcomb_kernel(x_ref, w1t_ref, zb_ref, w2t_ref, b2_ref, wl_ref, bl_ref,
                  o_ref, *, num_out, strip):
    # x_ref : (Bb, C, TM)  feature-map tile (channels x pixels)
    # w1t   : (F, C)       first conv weight restricted to feature channels, W^T
    # zb    : (Bb, F, 1)   per-batch bias  z @ W1[C:, :] + b1   (z folded in)
    # w2t   : (F, F)       second conv weight, W^T
    # b2    : (F, 1)
    # wl    : (F, 1) when num_out == 1, else (K, F)
    # bl    : (K, 1)
    # o_ref : (Bb, K, TM)
    w1t = w1t_ref[...]
    w2t = w2t_ref[...]
    b2 = b2_ref[...]
    wl = wl_ref[...]
    bl = bl_ref[...]

    Bb, _, TM = x_ref.shape
    n_strips = TM // strip
    unroll = (Bb * n_strips) <= 16

    for b in range(Bb):                       # static, small
        zb = zb_ref[b]                        # (F, 1)

        def strip_body(s, carry, b=b, zb=zb):
            s0 = pl.multiple_of(s * strip, strip)
            x = x_ref[b, :, pl.ds(s0, strip)]                           # (C, S)
            # layers[0]: Conv1x1(C+L -> F) + ReLU  (z contribution = zb bias)
            h = jnp.dot(w1t, x, preferred_element_type=jnp.float32)     # (F, S)
            h = jnp.maximum(h + zb, 0.0)
            # layers[1]: Conv1x1(F -> F) + ReLU   (no_convs_fcomb - 2 == 1)
            h = jnp.dot(w2t, h, preferred_element_type=jnp.float32)     # (F, S)
            h = jnp.maximum(h + b2, 0.0)
            # last_layer: Conv1x1(F -> K), no activation.
            if num_out == 1:
                # K == 1: VPU multiply + XLU sublane reduce (keep MXU out of
                # a 1-output-column matmul).
                o = jnp.sum(wl * h, axis=0, keepdims=True)              # (1, S)
            else:
                o = jnp.dot(wl, h, preferred_element_type=jnp.float32)  # (K, S)
            o_ref[b, :, pl.ds(s0, strip)] = (o + bl).astype(o_ref.dtype)
            return carry

        lax.fori_loop(0, n_strips, strip_body, 0, unroll=unroll)


def fcomb_pallas(feature_map, z, params, *, tm=4096):
    """feature_map: (B, C, H, W) NCHW float32; z: (B, L) float32.

    params: 'w1' (C+L, F), 'b1' (1, F), 'w2' (F, F), 'b2' (1, F),
            'wl' (F, K), 'bl' (1, K)  — weights already transposed so the math
            is x @ W (matching Conv2d weight (out, in, 1, 1) transposed).
    Returns (B, K, H, W) NCHW float32.
    """
    B, C, H, W = feature_map.shape
    F = params["w1"].shape[1]
    K = params["wl"].shape[1]
    HW = H * W

    # --- fold z into a per-batch first-layer bias (no tile(), no concat) ----
    zb = (z @ params["w1"][C:, :] + params["b1"]).astype(jnp.float32)   # (B, F)

    # --- small weight reshapes (KB-scale, done once outside the kernel) -----
    w1t = jnp.transpose(params["w1"][:C, :]).astype(jnp.float32)        # (F, C)
    w2t = jnp.transpose(params["w2"]).astype(jnp.float32)               # (F, F)
    b2c = params["b2"].reshape(F, 1).astype(jnp.float32)                # (F, 1)
    wl = (params["wl"] if K == 1
          else jnp.transpose(params["wl"])).astype(jnp.float32)         # (F,1)|(K,F)
    bl = params["bl"].reshape(K, 1).astype(jnp.float32)                 # (K, 1)

    # --- tiling: large per-step reads, non-degenerate tiles, >= 4 grid pts ---
    TM, Bb = _choose_tiles(B, C, HW, tm)
    strip = _choose_strip(TM)
    hw_p = _round_up(HW, TM)
    B_p = _round_up(B, Bb)

    # channels-on-sublanes / pixels-on-lanes view of the NCHW input (free
    # reshape); pad pixels to a multiple of TM and batch to a multiple of Bb
    # (padded rows/columns produce garbage that is sliced off below).
    x = feature_map.reshape(B, C, HW).astype(jnp.float32)
    if hw_p != HW:
        x = jnp.pad(x, ((0, 0), (0, 0), (0, hw_p - HW)))
    if B_p != B:
        x = jnp.pad(x, ((0, B_p - B), (0, 0), (0, 0)))
        zb = jnp.pad(zb, ((0, B_p - B), (0, 0)))
    zb = zb[:, :, None]                                                 # (B_p, F, 1)

    grid = (B_p // Bb, hw_p // TM)

    out = pl.pallas_call(
        functools.partial(_fcomb_kernel, num_out=K, strip=strip),
        out_shape=jax.ShapeDtypeStruct((B_p, K, hw_p), jnp.float32),
        grid_spec=pltpu.PrefetchScalarGridSpec(
            num_scalar_prefetch=0,
            grid=grid,
            in_specs=[
                pl.BlockSpec((Bb, C, TM), lambda b, p: (b, 0, p)),      # fm tile
                pl.BlockSpec(w1t.shape, lambda b, p: (0, 0)),           # W1^T
                pl.BlockSpec((Bb, F, 1), lambda b, p: (b, 0, 0)),       # per-batch zb
                pl.BlockSpec(w2t.shape, lambda b, p: (0, 0)),           # W2^T
                pl.BlockSpec(b2c.shape, lambda b, p: (0, 0)),           # b2
                pl.BlockSpec(wl.shape, lambda b, p: (0, 0)),            # last-layer w
                pl.BlockSpec(bl.shape, lambda b, p: (0, 0)),            # last-layer b
            ],
            out_specs=pl.BlockSpec((Bb, K, TM), lambda b, p: (b, 0, p)),
        ),
        compiler_params=pltpu.CompilerParams(
            # Both grid axes are independent -> shard across TensorCores
            # (v7x megacore); per-step VMEM is <= ~2 MiB, defaults are plenty.
            dimension_semantics=("parallel", "parallel")),
    )(x, w1t, zb, w2t, b2c, wl, bl)

    out = out[:B, :, :HW]
    return out.reshape(B, K, H, W)                                      # already NCHW


# -----------------------------------------------------------------------------
# Pure-JAX reference (original concat formulation) for a sanity check.
# -----------------------------------------------------------------------------
def fcomb_ref(feature_map, z, params):
    B, C, H, W = feature_map.shape
    L = z.shape[1]
    fm = jnp.transpose(feature_map, (0, 2, 3, 1))
    zt = jnp.broadcast_to(z[:, None, None, :], (B, H, W, L))
    x = jnp.concatenate([fm, zt], axis=-1).reshape(-1, C + L)
    h = jnp.maximum(x @ params["w1"] + params["b1"], 0.0)
    h = jnp.maximum(h @ params["w2"] + params["b2"], 0.0)
    o = h @ params["wl"] + params["bl"]
    K = params["wl"].shape[1]
    return jnp.transpose(o.reshape(B, H, W, K), (0, 3, 1, 2))


def _make_params(key, C, L, F, K):
    k1, k2, k3, kb1, kb2, kb3 = jax.random.split(key, 6)
    # Deterministic synthetic weights (stand-in for init_weights / orthogonal init).
    # TODO(synk): orthogonal/truncated-normal weight init is a training-time
    # detail, not part of the forward pass ported here.
    return {
        "w1": jax.random.normal(k1, (C + L, F), dtype=jnp.float32) * 0.1,
        "b1": jax.random.normal(kb1, (1, F), dtype=jnp.float32) * 0.01,
        "w2": jax.random.normal(k2, (F, F), dtype=jnp.float32) * 0.1,
        "b2": jax.random.normal(kb2, (1, F), dtype=jnp.float32) * 0.01,
        "wl": jax.random.normal(k3, (F, K), dtype=jnp.float32) * 0.1,
        "bl": jax.random.normal(kb3, (1, K), dtype=jnp.float32) * 0.01,
    }


def _check(B, C, H, W, L, K, key):
    k_fm, k_z, k_p = jax.random.split(key, 3)
    F = C                                   # num_filters[0]
    feature_map = jax.random.normal(k_fm, (B, C, H, W), dtype=jnp.float32)
    z = jax.random.normal(k_z, (B, L), dtype=jnp.float32)
    params = _make_params(k_p, C, L, F, K)

    out = jax.block_until_ready(fcomb_pallas(feature_map, z, params))
    ref = fcomb_ref(feature_map, z, params)
    assert out.shape == (B, K, H, W), out.shape
    # Slightly looser than pure-f32 identity: folding z into a per-batch bias
    # reassociates the first-layer reduction.
    err = float(jnp.max(jnp.abs(out - ref)))
    assert jnp.allclose(out, ref, atol=2e-3, rtol=2e-3), \
        f"mismatch vs reference ({B},{C},{H},{W},K={K}), max|err|={err}"


if __name__ == "__main__":
    # Module hyper-params (consistent with Fcomb.__init__):
    #   num_filters[0] = 32, latent_dim = 8, num_classes = 2 -> 1 output chan,
    #   no_convs_fcomb = 3  (conv+relu, conv+relu, last conv)
    key = jax.random.PRNGKey(0)
    k0, k1, k2 = jax.random.split(key, 3)

    # Main config: small feature map -> batch tiling path, K == 1.
    _check(B=2, C=32, H=16, W=16, L=8, K=1, key=k0)
    # K > 1 (num_classes > 2) + pixel padding (H*W not a multiple of 128).
    _check(B=1, C=32, H=12, W=12, L=8, K=3, key=k1)
    # Multi-strip inner loop + padded pixel tile (H*W = 1600 -> 13x128 tile).
    _check(B=1, C=32, H=40, W=40, L=8, K=1, key=k2)

    print("KERNEL_OK")
</pallas_src>

<mosaic_0001>
module attributes {stable_mosaic.version = 11 : i64} {
  func.func @_fcomb_kernel(%arg0: i32, %arg1: i32, %arg2: memref<2x32x256xf32, #tpu.memory_space<vmem>>, %arg3: memref<32x32xf32, #tpu.memory_space<vmem>>, %arg4: memref<2x32x1xf32, #tpu.memory_space<vmem>>, %arg5: memref<32x32xf32, #tpu.memory_space<vmem>>, %arg6: memref<32x1xf32, #tpu.memory_space<vmem>>, %arg7: memref<32x1xf32, #tpu.memory_space<vmem>>, %arg8: memref<1x1xf32, #tpu.memory_space<vmem>>, %arg9: memref<2x1x256xf32, #tpu.memory_space<vmem>>) attributes {dimension_semantics = [#tpu.dimension_semantics<parallel>, #tpu.dimension_semantics<parallel>], iteration_bounds = array<i64: 1, 1>, scalar_prefetch = 0 : i64, scratch_operands = 0 : i64, tpu.core_type = #tpu.core_type<tc>, window_params = [{transform_indices = @transform_0, window_bounds = array<i64: 2, 32, 256>}, {pipeline_mode = #tpu.pipeline_mode<synchronous>, transform_indices = @transform_1, window_bounds = array<i64: 32, 32>}, {transform_indices = @transform_2, window_bounds = array<i64: 2, 32, 1>}, {pipeline_mode = #tpu.pipeline_mode<synchronous>, transform_indices = @transform_3, window_bounds = array<i64: 32, 32>}, {pipeline_mode = #tpu.pipeline_mode<synchronous>, transform_indices = @transform_4, window_bounds = array<i64: 32, 1>}, {pipeline_mode = #tpu.pipeline_mode<synchronous>, transform_indices = @transform_5, window_bounds = array<i64: 32, 1>}, {pipeline_mode = #tpu.pipeline_mode<synchronous>, transform_indices = @transform_6, window_bounds = array<i64: 1, 1>}, {transform_indices = @transform_7, window_bounds = array<i64: 2, 1, 256>}]} {
    %c0 = arith.constant 0 : index
    %c0_0 = arith.constant 0 : index
    %0 = vector.load %arg3[%c0, %c0_0] : memref<32x32xf32, #tpu.memory_space<vmem>>, vector<32x32xf32>
    %c0_1 = arith.constant 0 : index
    %c0_2 = arith.constant 0 : index
    %1 = vector.load %arg5[%c0_1, %c0_2] : memref<32x32xf32, #tpu.memory_space<vmem>>, vector<32x32xf32>
    %c0_3 = arith.constant 0 : index
    %c0_4 = arith.constant 0 : index
    %2 = vector.load %arg6[%c0_3, %c0_4] : memref<32x1xf32, #tpu.memory_space<vmem>>, vector<32x1xf32>
    %c0_5 = arith.constant 0 : index
    %c0_6 = arith.constant 0 : index
    %3 = vector.load %arg7[%c0_5, %c0_6] : memref<32x1xf32, #tpu.memory_space<vmem>>, vector<32x1xf32>
    %c0_7 = arith.constant 0 : index
    %c0_8 = arith.constant 0 : index
    %4 = vector.load %arg8[%c0_7, %c0_8] : memref<1x1xf32, #tpu.memory_space<vmem>>, vector<1x1xf32>
    %c0_9 = arith.constant 0 : index
    %c0_10 = arith.constant 0 : index
    %c0_11 = arith.constant 0 : index
    %5 = vector.load %arg4[%c0_9, %c0_10, %c0_11] : memref<2x32x1xf32, #tpu.memory_space<vmem>>, vector<1x32x1xf32>
    %6 = vector.shape_cast %5 : vector<1x32x1xf32> to vector<32x1xf32>
    %c0_i32 = arith.constant 0 : i32
    %c256_i32 = arith.constant 256 : i32
    %7 = arith.muli %c0_i32, %c256_i32 : i32
    %8 = tpu.assume_multiple %7, 256 : i32
    %c0_12 = arith.constant 0 : index
    %c0_13 = arith.constant 0 : index
    %9 = arith.index_cast %8 : i32 to index
    %10 = vector.load %arg2[%c0_12, %c0_13, %9] : memref<2x32x256xf32, #tpu.memory_space<vmem>>, vector<1x32x256xf32>
    %11 = vector.shape_cast %10 : vector<1x32x256xf32> to vector<32x256xf32>
    %cst = arith.constant dense<0.000000e+00> : vector<32x256xf32>
    %12 = tpu.matmul %0, %11, %cst {dimension_numbers = #tpu.dot_dimension_numbers<[1], [0], [0], [1], [0, 0, 1, 1], [], []>} : vector<32x32xf32>, vector<32x256xf32>, vector<32x256xf32> -> vector<32x256xf32>
    %13 = vector.broadcast %6 : vector<32x1xf32> to vector<32x256xf32>
    %14 = arith.addf %12, %13 : vector<32x256xf32>
    %cst_14 = arith.constant 0.000000e+00 : f32
    %15 = vector.broadcast %cst_14 : f32 to vector<32x256xf32>
    %16 = arith.maximumf %14, %15 : vector<32x256xf32>
    %cst_15 = arith.constant dense<0.000000e+00> : vector<32x256xf32>
    %17 = tpu.matmul %1, %16, %cst_15 {dimension_numbers = #tpu.dot_dimension_numbers<[1], [0], [0], [1], [0, 0, 1, 1], [], []>} : vector<32x32xf32>, vector<32x256xf32>, vector<32x256xf32> -> vector<32x256xf32>
    %18 = vector.broadcast %2 : vector<32x1xf32> to vector<32x256xf32>
    %19 = arith.addf %17, %18 : vector<32x256xf32>
    %cst_16 = arith.constant 0.000000e+00 : f32
    %20 = vector.broadcast %cst_16 : f32 to vector<32x256xf32>
    %21 = arith.maximumf %19, %20 : vector<32x256xf32>
    %22 = vector.broadcast %3 : vector<32x1xf32> to vector<32x256xf32>
    %23 = arith.mulf %22, %21 : vector<32x256xf32>
    %cst_17 = arith.constant dense<0.000000e+00> : vector<256xf32>
    %24 = vector.multi_reduction <add>, %23, %cst_17 [0] : vector<32x256xf32> to vector<256xf32>
    %25 = vector.shape_cast %24 : vector<256xf32> to vector<1x256xf32>
    %26 = vector.broadcast %4 : vector<1x1xf32> to vector<1x256xf32>
    %27 = arith.addf %25, %26 : vector<1x256xf32>
    %c0_18 = arith.constant 0 : index
    %c0_19 = arith.constant 0 : index
    %28 = arith.index_cast %8 : i32 to index
    %29 = vector.load %arg9[%c0_18, %c0_19, %28] : memref<2x1x256xf32, #tpu.memory_space<vmem>>, vector<1x1x256xf32>
    %30 = vector.shape_cast %29 : vector<1x1x256xf32> to vector<1x256xf32>
    %31 = vector.shape_cast %27 : vector<1x256xf32> to vector<1x1x256xf32>
    tpu.vector_store %arg9[%c0_18, %c0_19, %28], %31 {strides = array<i32>} : memref<2x1x256xf32, #tpu.memory_space<vmem>>, vector<1x1x256xf32>,
    %c1_i32 = arith.constant 1 : i32
    %c1 = arith.constant 1 : index
    %c0_20 = arith.constant 0 : index
    %c0_21 = arith.constant 0 : index
    %32 = vector.load %arg4[%c1, %c0_20, %c0_21] : memref<2x32x1xf32, #tpu.memory_space<vmem>>, vector<1x32x1xf32>
    %33 = vector.shape_cast %32 : vector<1x32x1xf32> to vector<32x1xf32>
    %c0_i32_22 = arith.constant 0 : i32
    %c256_i32_23 = arith.constant 256 : i32
    %34 = arith.muli %c0_i32_22, %c256_i32_23 : i32
    %35 = tpu.assume_multiple %34, 256 : i32
    %c1_24 = arith.constant 1 : index
    %c0_25 = arith.constant 0 : index
    %36 = arith.index_cast %35 : i32 to index
    %37 = vector.load %arg2[%c1_24, %c0_25, %36] : memref<2x32x256xf32, #tpu.memory_space<vmem>>, vector<1x32x256xf32>
    %38 = vector.shape_cast %37 : vector<1x32x256xf32> to vector<32x256xf32>
    %cst_26 = arith.constant dense<0.000000e+00> : vector<32x256xf32>
    %39 = tpu.matmul %0, %38, %cst_26 {dimension_numbers = #tpu.dot_dimension_numbers<[1], [0], [0], [1], [0, 0, 1, 1], [], []>} : vector<32x32xf32>, vector<32x256xf32>, vector<32x256xf32> -> vector<32x256xf32>
    %40 = vector.broadcast %33 : vector<32x1xf32> to vector<32x256xf32>
    %41 = arith.addf %39, %40 : vector<32x256xf32>
    %cst_27 = arith.constant 0.000000e+00 : f32
    %42 = vector.broadcast %cst_27 : f32 to vector<32x256xf32>
    %43 = arith.maximumf %41, %42 : vector<32x256xf32>
    %cst_28 = arith.constant dense<0.000000e+00> : vector<32x256xf32>
    %44 = tpu.matmul %1, %43, %cst_28 {dimension_numbers = #tpu.dot_dimension_numbers<[1], [0], [0], [1], [0, 0, 1, 1], [], []>} : vector<32x32xf32>, vector<32x256xf32>, vector<32x256xf32> -> vector<32x256xf32>
    %45 = vector.broadcast %2 : vector<32x1xf32> to vector<32x256xf32>
    %46 = arith.addf %44, %45 : vector<32x256xf32>
    %cst_29 = arith.constant 0.000000e+00 : f32
    %47 = vector.broadcast %cst_29 : f32 to vector<32x256xf32>
    %48 = arith.maximumf %46, %47 : vector<32x256xf32>
    %49 = vector.broadcast %3 : vector<32x1xf32> to vector<32x256xf32>
    %50 = arith.mulf %49, %48 : vector<32x256xf32>
    %cst_30 = arith.constant dense<0.000000e+00> : vector<256xf32>
    %51 = vector.multi_reduction <add>, %50, %cst_30 [0] : vector<32x256xf32> to vector<256xf32>
    %52 = vector.shape_cast %51 : vector<256xf32> to vector<1x256xf32>
    %53 = vector.broadcast %4 : vector<1x1xf32> to vector<1x256xf32>
    %54 = arith.addf %52, %53 : vector<1x256xf32>
    %c1_31 = arith.constant 1 : index
    %c0_32 = arith.constant 0 : index
    %55 = arith.index_cast %35 : i32 to index
    %56 = vector.load %arg9[%c1_31, %c0_32, %55] : memref<2x1x256xf32, #tpu.memory_space<vmem>>, vector<1x1x256xf32>
    %57 = vector.shape_cast %56 : vector<1x1x256xf32> to vector<1x256xf32>
    %58 = vector.shape_cast %54 : vector<1x256xf32> to vector<1x1x256xf32>
    tpu.vector_store %arg9[%c1_31, %c0_32, %55], %58 {strides = array<i32>} : memref<2x1x256xf32, #tpu.memory_space<vmem>>, vector<1x1x256xf32>,
    %c1_i32_33 = arith.constant 1 : i32
    return
  }
  func.func @transform_0(%arg0: i32, %arg1: i32) -> (i32, i32, i32) {
    %c0_i32 = arith.constant 0 : i32
    %c0_i32_0 = arith.constant 0 : i32
    return %arg0, %c0_i32, %arg1 : i32, i32, i32
  }
  func.func @transform_1(%arg0: i32, %arg1: i32) -> (i32, i32) {
    %c0_i32 = arith.constant 0 : i32
    %c0_i32_0 = arith.constant 0 : i32
    %c0_i32_1 = arith.constant 0 : i32
    return %c0_i32, %c0_i32_0 : i32, i32
  }
  func.func @transform_2(%arg0: i32, %arg1: i32) -> (i32, i32, i32) {
    %c0_i32 = arith.constant 0 : i32
    %c0_i32_0 = arith.constant 0 : i32
    %c0_i32_1 = arith.constant 0 : i32
    return %arg0, %c0_i32, %c0_i32_0 : i32, i32, i32
  }
  func.func @transform_3(%arg0: i32, %arg1: i32) -> (i32, i32) {
    %c0_i32 = arith.constant 0 : i32
    %c0_i32_0 = arith.constant 0 : i32
    %c0_i32_1 = arith.constant 0 : i32
    return %c0_i32, %c0_i32_0 : i32, i32
  }
  func.func @transform_4(%arg0: i32, %arg1: i32) -> (i32, i32) {
    %c0_i32 = arith.constant 0 : i32
    %c0_i32_0 = arith.constant 0 : i32
    %c0_i32_1 = arith.constant 0 : i32
    return %c0_i32, %c0_i32_0 : i32, i32
  }
  func.func @transform_5(%arg0: i32, %arg1: i32) -> (i32, i32) {
    %c0_i32 = arith.constant 0 : i32
    %c0_i32_0 = arith.constant 0 : i32
    %c0_i32_1 = arith.constant 0 : i32
    return %c0_i32, %c0_i32_0 : i32, i32
  }
  func.func @transform_6(%arg0: i32, %arg1: i32) -> (i32, i32) {
    %c0_i32 = arith.constant 0 : i32
    %c0_i32_0 = arith.constant 0 : i32
    %c0_i32_1 = arith.constant 0 : i32
    return %c0_i32, %c0_i32_0 : i32, i32
  }
  func.func @transform_7(%arg0: i32, %arg1: i32) -> (i32, i32, i32) {
    %c0_i32 = arith.constant 0 : i32
    %c0_i32_0 = arith.constant 0 : i32
    return %arg0, %c0_i32, %arg1 : i32, i32, i32
  }
}

</mosaic_0001>

<bundles_post_ra>
// kernel: tpu_custom_call.1
= control target key start
LH: loop header
LB: loop body
LE: loop exit
PB: predicated region body
PF: predicated region fallthrough
CT: control target
= control target key end

     0   :  { %s877_s0 = inlined_call_operand.hbm [shape: f32[2,32,256], index: 0, kind: input, shape index: {}]   ;;  %s878_s1 = inlined_call_operand.vmem [shape: f32[32,32], index: 1, kind: input, shape index: {}]   ;;  %s879_s2 = inlined_call_operand.vmem [shape: f32[2,32,1], index: 2, kind: input, shape index: {}]   ;;  %s880_s3 = inlined_call_operand.vmem [shape: f32[32,32], index: 3, kind: input, shape index: {}]   ;;  %s881_s4 = inlined_call_operand.vmem [shape: f32[32,1], index: 4, kind: input, shape index: {}]   ;;  %s882_s5 = inlined_call_operand.vmem [shape: f32[32,1], index: 5, kind: input, shape index: {}]   ;;  %s883_s6 = inlined_call_operand.<no memory space> [shape: f32[1,1], index: 6, kind: input, shape index: {}]   ;;  %s884_s7 = inlined_call_operand.hbm [shape: f32[2,1,256], index: 7, kind: output, shape index: {}]  }
   0x1   :  { %v12_v0 = vstv %s883_s6 }
   0x2   :  { %13 = vst [vmem:[#allocation2] sm:$0x1] %v12_v0 }
   0x3   :  { %14 = vsyncpa [#allocation4], 0 }
   0x4   :  { %15 = vsyncpa [#allocation5], 0  ;;  %s20_s28 = sshll.u32 %s877_s0, 4  ;;  %s659_s29 = smov [#allocation3]   ;;  %s21_s28 = int_to_ptr.hbm [resolvable:$true] %s20_s28 }
   0x5   :  { %s22_s30 = sshll.u32 %s659_s29, 4  ;;  %s660_s8 = smov 256   ;;  %s23_s30 = int_to_ptr.vmem [resolvable:$true] %s22_s30 }
   0x6   :  { %s661_s9 = smov 16  }
   0x7   :  { %28 = dma.hbm_to_vmem [thread:$0]  %s21_s28, 2048, %s23_s30, [#allocation4], %s660_s8, %s660_s8, %s661_s9  }
   0x8   :  { %655 = dma.done.wait [#allocation4], 2048  }
   0x9   :  { %656 = vsyncadd [#allocation4], 4294965248  ;;  %v662_v1 = vmov 0   ;;  %v72_v2 = vld [vmem:[#allocation3 + $0x30] sm:$0xff]  ;;  %v73_v3 = vld [vmem:[#allocation3 + $0x38] sm:$0xff]  ;;  %vm94_vm0 = vcmask 261120  }
   0xa   :  { %605 = vset.pattern.permute.xlu1 %v662_v1  ;;  %604 = vset.pattern.permute.xlu0 %v662_v1  ;;  %v70_v4 = vld [vmem:[#allocation3 + $0x20] sm:$0xff]  ;;  %v71_v5 = vld [vmem:[#allocation3 + $0x28] sm:$0xff]  ;;  %v68_v6 = vld [vmem:[#allocation3 + $0x10] sm:$0xff]  ;;  %vm328_vm1 = vcmask 1040384   ;;  %s546_s30 = sshll.u32 %s884_s7, 4  ;;  %s664_s8 = smov 32   ;;  %s547_s30 = int_to_ptr.hbm [resolvable:$true] %s546_s30 }
   0xb   :  { %606 = vset.pattern.permute.xlu2 %v662_v1  ;;  %119 = vmatpush.msra.mxu0 %v72_v2  ;;  %v69_v7 = vld [vmem:[#allocation3 + $0x18] sm:$0xff]  ;;  %v63_v8 = vld [vmem:[%s879_s2 + $0x8] sm:$0xff]  ;;  %v350_v13 = vld [vmem:[#allocation3 + $0x70] sm:$0xff]  ;;  %s665_s9 = smov 2  }
   0xc   :  { %148 = vmatpush.msra.mxu1 %v73_v3  ;;  %v66_v9 = vld [vmem:[#allocation3] sm:$0xff]  ;;  %v67_v10 = vld [vmem:[#allocation3 + $0x8] sm:$0xff]  ;;  %81 = vperm.xlu1 %605, %v63_v8   ;;  %v65_v11 = vld [vmem:[%s879_s2 + $0x18] sm:$0xff] }
   0xd   :  { %120 = vmatpush.msra.mxu0 %v70_v4  ;;  %v45_v12 = vld [vmem:[%s878_s1] sm:$0xff]  ;;  %91 = vperm.xlu0 %604, %v65_v11   ;;  %v349_v16 = vld [vmem:[#allocation3 + $0x68] sm:$0xff]  ;;  %v346_v18 = vld [vmem:[#allocation3 + $0x50] sm:$0xff] }
   0xe   :  { %149 = vmatpush.msra.mxu1 %v71_v5  ;;  %v351_v14 = vld [vmem:[#allocation3 + $0x78] sm:$0xff]  ;;  %v348_v15 = vld [vmem:[#allocation3 + $0x60] sm:$0xff]  ;;  %v64_v20 = vld [vmem:[%s879_s2 + $0x10] sm:$0xff] }
   0xf   :  { %121 = vmatpush.msra.mxu0 %v68_v6  ;;  %v62_v17 = vld [vmem:[%s879_s2] sm:$0xff]  ;;  %v345_v22 = vld [vmem:[#allocation3 + $0x48] sm:$0xff]  ;;  %v48_v29 = vld [vmem:[%s878_s1 + $0x18] sm:$0xff] }
  0x10   :  { %150 = vmatpush.msra.mxu1 %v69_v7  ;;  %v347_v19 = vld [vmem:[#allocation3 + $0x58] sm:$0xff]  ;;  %v344_v21 = vld [vmem:[#allocation3 + $0x40] sm:$0xff]  ;;  %v47_v26 = vld [vmem:[%s878_s1 + $0x10] sm:$0xff] }
  0x11   :  { %122 = vmatpush.msra.mxu0 %v66_v9  ;;  %v46_v23 = vld [vmem:[%s878_s1 + $0x8] sm:$0xff]  ;;  %v577_v24 = vld [vmem:[%s879_s2 + $0x20] sm:$0xff]  ;;  %v55_v27 = vld [vmem:[%s881_s4 + $0x10] sm:$0xff] }
  0x12   :  { %151 = vmatpush.msra.mxu1 %v67_v10  ;;  %561 = vmatmul.msk.f32.vlgmr.msra.gmra.mxu0 %vm94_vm0, %v45_v12  ;;  %v578_v25 = vld [vmem:[%s879_s2 + $0x28] sm:$0xff]  ;;  %v580_v30 = vld [vmem:[%s879_s2 + $0x38] sm:$0xff]  ;;  %v57_v32 = vld [vmem:[%s882_s5] sm:$0xff] }
  0x13   :  { %565 = vmatmul.msk.f32.vlgmr.msra.gmra.mxu1 %vm94_vm0, %v45_v12  ;;  %384 = vmatpush.msrb.mxu0 %v350_v13  ;;  %v54_v28 = vld [vmem:[%s881_s4 + $0x8] sm:$0xff]  ;;  %v579_v33 = vld [vmem:[%s879_s2 + $0x30] sm:$0xff]  ;;  %v61_v34 = vld [vmem:[#allocation2] sm:$0x1] }
  0x14   :  { %413 = vmatpush.msrb.mxu1 %v351_v14  ;;  %76 = vperm.xlu1 %605, %v62_v17   ;;  %v58_v31 = vld [vmem:[%s882_s5 + $0x8] sm:$0xff]  ;;  %v60_v35 = vld [vmem:[%s882_s5 + $0x18] sm:$0xff]  ;;  %v53_v36 = vld [vmem:[%s881_s4] sm:$0xff] }
  0x15   :  { %385 = vmatpush.msrb.mxu0 %v348_v15  ;;  %86 = vperm.xlu0 %604, %v64_v20   ;;  %v56_v37 = vld [vmem:[%s881_s4 + $0x18] sm:$0xff]  ;;  %v59_v38 = vld [vmem:[%s882_s5 + $0x10] sm:$0xff]  ;;  %v49_v5 = vld [vmem:[%s880_s3] sm:$0xff] }
  0x16   :  { %414 = vmatpush.msrb.mxu1 %v349_v16  ;;  %369 = vperm.xlu2 %606, %v580_v30   ;;  %v50_v8 = vld [vmem:[%s880_s3 + $0x8] sm:$0xff]  ;;  %v52_v20 = vld [vmem:[%s880_s3 + $0x18] sm:$0xff] }
  0x17   :  { %386 = vmatpush.msrb.mxu0 %v346_v18 }
  0x18   :  { %415 = vmatpush.msrb.mxu1 %v347_v19 }
  0x19   :  { %387 = vmatpush.msrb.mxu0 %v344_v21 }
  0x1a   :  { %416 = vmatpush.msrb.mxu1 %v345_v22  ;;  %562 = vmatmul.msk.f32.gmra.mxu0 %vm94_vm0, %v46_v23 }
  0x1b   :  { %566 = vmatmul.msk.f32.gmra.mxu1 %vm94_vm0, %v46_v23 }
  0x1c   :  { %354 = vperm.xlu1 %605, %v577_v24  }
  0x1d   :  { %359 = vperm.xlu0 %604, %v578_v25  }
  0x1e   :  { %364 = vperm.xlu2 %606, %v579_v33  }
  0x22   :  { %563 = vmatmul.msk.f32.gmra.mxu0 %vm94_vm0, %v47_v26 }
  0x23   :  { %567 = vmatmul.msk.f32.gmra.mxu1 %vm94_vm0, %v47_v26 }
  0x24   :  { %185 = vperm.xlu1 %605, %v55_v27  }
  0x25   :  { %180 = vperm.xlu0 %604, %v54_v28  }
  0x26   :  { %175 = vperm.xlu2 %606, %v53_v36  }
  0x2a   :  { %564 = vmatmul.msk.f32.gmra.mxu0 %vm94_vm0, %v48_v29 }
  0x2b   :  { %568 = vmatmul.msk.f32.gmra.mxu1 %vm94_vm0, %v48_v29 }
  0x2c   :  { %278 = vperm.xlu1 %605, %v58_v31  }
  0x2d   :  { %273 = vperm.xlu0 %604, %v57_v32  }
  0x2e   :  { %190 = vperm.xlu2 %606, %v56_v37  }
  0x32   :  { %581 = vmatmul.msk.f32.vlgmr.msrb.gmra.mxu0 %vm94_vm0, %v45_v12 }
  0x33   :  { %585 = vmatmul.msk.f32.vlgmr.msrb.gmra.mxu1 %vm94_vm0, %v45_v12  ;;  %v51_v12 = vld [vmem:[%s880_s3 + $0x10] sm:$0xff]  ;;  %s663_s3 = smov [#allocation6]  }
  0x34   :  { %319 = vperm.xlu1 %605, %v61_v34   ;;  %s544_s27 = sshll.u32 %s663_s3, 4  ;;  %s545_s27 = int_to_ptr.vmem [resolvable:$true] %s544_s27 }
  0x35   :  { %288 = vperm.xlu0 %604, %v60_v35  }
  0x36   :  { %283 = vperm.xlu2 %606, %v59_v38  }
  0x3a   :  { %582 = vmatmul.msk.f32.gmra.mxu0 %vm94_vm0, %v46_v23 }
  0x3b   :  { %586 = vmatmul.msk.f32.gmra.mxu1 %vm94_vm0, %v46_v23 }
  0x42   :  { %583 = vmatmul.msk.f32.gmra.mxu0 %vm94_vm0, %v47_v26 }
  0x43   :  { %587 = vmatmul.msk.f32.gmra.mxu1 %vm94_vm0, %v47_v26 }
  0x4a   :  { %584 = vmatmul.msk.f32.gmra.mxu0 %vm94_vm0, %v48_v29 }
  0x4b   :  { %588 = vmatmul.msk.f32.gmra.mxu1 %vm94_vm0, %v48_v29 }
  0x70   :  { %v370_v9 = vpop.permute.xlu2 %369 }
  0x78   :  { %v365_v13 = vpop.permute.xlu2 %364 }
  0x7e   :  { %v82_v46 = vpop.permute.xlu1 %81 }
  0x7f   :  { %v92_v43 = vpop.permute.xlu0 %91 }
  0x80   :  { %v816_v37 = vpop.permute.xlu2 %175 }
  0x86   :  { %v77_v58 = vpop.permute.xlu1 %76 }
  0x87   :  { %v87_v47 = vpop.permute.xlu0 %86 }
  0x8e   :  { %v355_v26 = vpop.permute.xlu1 %354 }
  0x8f   :  { %v124_v39 = vpop.f32.mrf.mxu0  ;;  %v360_v21 = vpop.permute.xlu0 %359 }
  0x90   :  { %v153_v40 = vpop.f32.mrf.mxu1  ;;  %v125_v59 = vadd.f32 %v124_v39, %v77_v58 }
  0x91   :  { %v154_v60 = vadd.f32 %v153_v40, %v77_v58 }
  0x92   :  { %v165_v3 = vmax.f32 %v125_v59, 0.0 }
  0x93   :  { %v166_v4 = vmax.f32 %v154_v60, 0.0 }
  0x97   :  { %v127_v41 = vpop.f32.mrf.mxu0  ;;  %v818_v38 = vpop.permute.xlu0 %180 }
  0x98   :  { %v156_v42 = vpop.f32.mrf.mxu1  ;;  %v128_v54 = vadd.f32 %v127_v41, %v82_v46  ;;  %v820_v41 = vpop.permute.xlu1 %185 }
  0x99   :  { %v157_v55 = vadd.f32 %v156_v42, %v82_v46  ;;  %v822_v42 = vpop.permute.xlu2 %190 }
  0x9a   :  { %v167_v63 = vmax.f32 %v128_v54, 0.0 }
  0x9b   :  { %v168_v0 = vmax.f32 %v157_v55, 0.0 }
  0x9f   :  { %v130_v44 = vpop.f32.mrf.mxu0 }
  0xa0   :  { %v159_v45 = vpop.f32.mrf.mxu1  ;;  %v131_v50 = vadd.f32 %v130_v44, %v87_v47  ;;  %v832_v58 = vpop.permute.xlu1 %278 }
  0xa1   :  { %v160_v51 = vadd.f32 %v159_v45, %v87_v47  ;;  %v834_v59 = vpop.permute.xlu2 %283 }
  0xa2   :  { %v169_v61 = vmax.f32 %v131_v50, 0.0 }
  0xa3   :  { %v170_v62 = vmax.f32 %v160_v51, 0.0  ;;  %v830_v51 = vpop.permute.xlu0 %273 }
  0xa7   :  { %v133_v48 = vpop.f32.mrf.mxu0 }
  0xa8   :  { %v162_v49 = vpop.f32.mrf.mxu1  ;;  %v134_v52 = vadd.f32 %v133_v48, %v92_v43 }
  0xa9   :  { %v163_v53 = vadd.f32 %v162_v49, %v92_v43 }
  0xaa   :  { %v171_v56 = vmax.f32 %v134_v52, 0.0 }
  0xab   :  { %v172_v57 = vmax.f32 %v163_v53, 0.0 }
  0xac   :  { %217 = vmatpush.msra.mxu2 %v171_v56 }
  0xad   :  { %246 = vmatpush.msra.mxu3 %v172_v57 }
  0xae   :  { %218 = vmatpush.msra.mxu2 %v169_v61 }
  0xaf   :  { %247 = vmatpush.msra.mxu3 %v170_v62  ;;  %v389_v1 = vpop.f32.mrf.mxu0 }
  0xb0   :  { %v418_v2 = vpop.f32.mrf.mxu1  ;;  %219 = vmatpush.msra.mxu2 %v167_v63  ;;  %v390_v27 = vadd.f32 %v389_v1, %v355_v26 }
  0xb1   :  { %248 = vmatpush.msra.mxu3 %v168_v0  ;;  %v419_v28 = vadd.f32 %v418_v2, %v355_v26 }
  0xb2   :  { %220 = vmatpush.msra.mxu2 %v165_v3  ;;  %v430_v33 = vmax.f32 %v390_v27, 0.0 }
  0xb3   :  { %249 = vmatpush.msra.mxu3 %v166_v4  ;;  %569 = vmatmul.msk.f32.vlgmr.msra.gmra.mxu2 %vm94_vm0, %v49_v5  ;;  %v431_v34 = vmax.f32 %v419_v28, 0.0 }
  0xb4   :  { %573 = vmatmul.msk.f32.vlgmr.msra.gmra.mxu3 %vm94_vm0, %v49_v5 }
  0xb7   :  { %v392_v6 = vpop.f32.mrf.mxu0 }
  0xb8   :  { %v421_v7 = vpop.f32.mrf.mxu1  ;;  %v393_v22 = vadd.f32 %v392_v6, %v360_v21 }
  0xb9   :  { %v422_v23 = vadd.f32 %v421_v7, %v360_v21 }
  0xba   :  { %v432_v31 = vmax.f32 %v393_v22, 0.0 }
  0xbb   :  { %570 = vmatmul.msk.f32.gmra.mxu2 %vm94_vm0, %v50_v8  ;;  %v433_v32 = vmax.f32 %v422_v23, 0.0 }
  0xbc   :  { %574 = vmatmul.msk.f32.gmra.mxu3 %vm94_vm0, %v50_v8 }
  0xbf   :  { %v395_v10 = vpop.f32.mrf.mxu0 }
  0xc0   :  { %v424_v11 = vpop.f32.mrf.mxu1  ;;  %v396_v16 = vadd.f32 %v395_v10, %v365_v13  ;;  %v844_v10 = vpop.permute.xlu0 %288 }
  0xc1   :  { %v425_v17 = vadd.f32 %v424_v11, %v365_v13 }
  0xc2   :  { %v434_v29 = vmax.f32 %v396_v16, 0.0 }
  0xc3   :  { %571 = vmatmul.msk.f32.gmra.mxu2 %vm94_vm0, %v51_v12  ;;  %v435_v30 = vmax.f32 %v425_v17, 0.0 }
  0xc4   :  { %575 = vmatmul.msk.f32.gmra.mxu3 %vm94_vm0, %v51_v12 }
  0xc7   :  { %v398_v14 = vpop.f32.mrf.mxu0 }
  0xc8   :  { %v427_v15 = vpop.f32.mrf.mxu1  ;;  %v399_v18 = vadd.f32 %v398_v14, %v370_v9 }
  0xc9   :  { %v428_v19 = vadd.f32 %v427_v15, %v370_v9 }
  0xca   :  { %v436_v24 = vmax.f32 %v399_v18, 0.0 }
  0xcb   :  { %v437_v25 = vmax.f32 %v428_v19, 0.0  ;;  %572 = vmatmul.msk.f32.gmra.mxu2 %vm94_vm0, %v52_v20 }
  0xcc   :  { %576 = vmatmul.msk.f32.gmra.mxu3 %vm94_vm0, %v52_v20  ;;  %450 = vmatpush.msrb.mxu2 %v436_v24 }
  0xcd   :  { %479 = vmatpush.msrb.mxu3 %v437_v25  ;;  %v320_v25 = vpop.permute.xlu1 %319 }
  0xce   :  { %451 = vmatpush.msrb.mxu2 %v434_v29 }
  0xcf   :  { %480 = vmatpush.msrb.mxu3 %v435_v30 }
  0xd0   :  { %452 = vmatpush.msrb.mxu2 %v432_v31 }
  0xd1   :  { %481 = vmatpush.msrb.mxu3 %v433_v32  ;;  %v331_v32 = vlaneseq }
  0xd2   :  { %453 = vmatpush.msrb.mxu2 %v430_v33  ;;  %v322_v33 = vperm.slane %v320_v25, 0 }
  0xd3   :  { %482 = vmatpush.msrb.mxu3 %v431_v34  ;;  %589 = vmatmul.msk.f32.vlgmr.msrb.gmra.mxu2 %vm94_vm0, %v49_v5  ;;  %vm848_vm2 = vcmp.lt.s32.totalorder %v331_v32, 256 }
  0xd4   :  { %593 = vmatmul.msk.f32.vlgmr.msrb.gmra.mxu3 %vm94_vm0, %v49_v5 }
  0xdb   :  { %590 = vmatmul.msk.f32.gmra.mxu2 %vm94_vm0, %v50_v8 }
  0xdc   :  { %594 = vmatmul.msk.f32.gmra.mxu3 %vm94_vm0, %v50_v8 }
  0xe3   :  { %591 = vmatmul.msk.f32.gmra.mxu2 %vm94_vm0, %v51_v12 }
  0xe4   :  { %595 = vmatmul.msk.f32.gmra.mxu3 %vm94_vm0, %v51_v12 }
  0xeb   :  { %592 = vmatmul.msk.f32.gmra.mxu2 %vm94_vm0, %v52_v20 }
  0xec   :  { %596 = vmatmul.msk.f32.gmra.mxu3 %vm94_vm0, %v52_v20 }
 0x136   :  { %v222_v35 = vpop.f32.mrf.mxu2 }
 0x137   :  { %v251_v36 = vpop.f32.mrf.mxu3  ;;  %v223_v45 = vadd.f32 %v222_v35, %v816_v37 }
 0x138   :  { %v252_v46 = vadd.f32 %v251_v36, %v816_v37 }
 0x139   :  { %v263_v54 = vmax.f32 %v223_v45, 0.0 }
 0x13a   :  { %v264_v55 = vmax.f32 %v252_v46, 0.0 }
 0x13b   :  { %v291_v62 = vmul.f32 %v830_v51, %v263_v54 }
 0x13c   :  { %v292_v63 = vmul.f32 %v830_v51, %v264_v55 }
 0x13e   :  { %v225_v39 = vpop.f32.mrf.mxu2 }
 0x13f   :  { %v254_v40 = vpop.f32.mrf.mxu3  ;;  %v226_v43 = vadd.f32 %v225_v39, %v818_v38 }
 0x140   :  { %v255_v44 = vadd.f32 %v254_v40, %v818_v38 }
 0x141   :  { %v265_v52 = vmax.f32 %v226_v43, 0.0 }
 0x142   :  { %v266_v53 = vmax.f32 %v255_v44, 0.0 }
 0x143   :  { %v293_v60 = vmul.f32 %v832_v58, %v265_v52 }
 0x144   :  { %v294_v61 = vmul.f32 %v832_v58, %v266_v53 }
 0x145   :  { %v299_v6 = vadd.f32 %v293_v60, %v291_v62 }
 0x146   :  { %v228_v47 = vpop.f32.mrf.mxu2  ;;  %v308_v7 = vadd.f32 %v294_v61, %v292_v63 }
 0x147   :  { %v257_v48 = vpop.f32.mrf.mxu3  ;;  %v229_v49 = vadd.f32 %v228_v47, %v820_v41 }
 0x148   :  { %v258_v50 = vadd.f32 %v257_v48, %v820_v41 }
 0x149   :  { %v267_v56 = vmax.f32 %v229_v49, 0.0 }
 0x14a   :  { %v268_v57 = vmax.f32 %v258_v50, 0.0 }
 0x14b   :  { %v295_v2 = vmul.f32 %v834_v59, %v267_v56 }
 0x14c   :  { %v296_v3 = vmul.f32 %v834_v59, %v268_v57 }
 0x14d   :  { %v300_v11 = vadd.f32 %v299_v6, %v295_v2 }
 0x14e   :  { %v231_v0 = vpop.f32.mrf.mxu2  ;;  %v309_v12 = vadd.f32 %v308_v7, %v296_v3 }
 0x14f   :  { %v260_v1 = vpop.f32.mrf.mxu3  ;;  %v232_v4 = vadd.f32 %v231_v0, %v822_v42 }
 0x150   :  { %v261_v5 = vadd.f32 %v260_v1, %v822_v42 }
 0x151   :  { %v269_v8 = vmax.f32 %v232_v4, 0.0 }
 0x152   :  { %v270_v9 = vmax.f32 %v261_v5, 0.0 }
 0x153   :  { %v297_v13 = vmul.f32 %v844_v10, %v269_v8 }
 0x154   :  { %v298_v14 = vmul.f32 %v844_v10, %v270_v9 }
 0x155   :  { %v301_v15 = vadd.f32 %v300_v11, %v297_v13 }
 0x156   :  { %v310_v16 = vadd.f32 %v309_v12, %v298_v14  ;;  %v455_v17 = vpop.f32.mrf.mxu2 }
 0x157   :  { %v484_v18 = vpop.f32.mrf.mxu3  ;;  %v302_v19 = vrot.slane %v301_v15, 4  ;;  %v456_v46 = vadd.f32 %v455_v17, %v816_v37 }
 0x158   :  { %v311_v20 = vrot.slane %v310_v16, 4  ;;  %v485_v47 = vadd.f32 %v484_v18, %v816_v37 }
 0x159   :  { %v303_v21 = vadd.f32 %v302_v19, %v301_v15  ;;  %v496_v56 = vmax.f32 %v456_v46, 0.0 }
 0x15a   :  { %v312_v22 = vadd.f32 %v311_v20, %v310_v16  ;;  %v497_v57 = vmax.f32 %v485_v47, 0.0 }
 0x15b   :  { %v304_v23 = vrot.slane %v303_v21, 2  ;;  %v504_v62 = vmul.f32 %v496_v56, %v830_v51 }
 0x15c   :  { %v313_v24 = vrot.slane %v312_v22, 2  ;;  %v505_v63 = vmul.f32 %v497_v57, %v830_v51 }
 0x15d   :  { %v305_v26 = vadd.f32 %v304_v23, %v303_v21 }
 0x15e   :  { %v314_v27 = vadd.f32 %v313_v24, %v312_v22  ;;  %v458_v28 = vpop.f32.mrf.mxu2 }
 0x15f   :  { %v487_v29 = vpop.f32.mrf.mxu3  ;;  %v306_v30 = vrot.slane %v305_v26, 1  ;;  %v459_v44 = vadd.f32 %v458_v28, %v818_v38 }
 0x160   :  { %v315_v31 = vrot.slane %v314_v27, 1  ;;  %v488_v45 = vadd.f32 %v487_v29, %v818_v38 }
 0x161   :  { %v307_v34 = vadd.f32 %v306_v30, %v305_v26  ;;  %v498_v54 = vmax.f32 %v459_v44, 0.0 }
 0x162   :  { %v316_v35 = vadd.f32 %v315_v31, %v314_v27  ;;  %v499_v55 = vmax.f32 %v488_v45, 0.0 }
 0x163   :  { %v323_v40 = vadd.f32 %v322_v33, %v307_v34  ;;  %v506_v61 = vmul.f32 %v498_v54, %v832_v58 }
 0x164   :  { %v324_v36 = vadd.f32 %v322_v33, %v316_v35  ;;  %v507_v37 = vmul.f32 %v499_v55, %v832_v58 }
 0x165   :  { %v512_v5 = vadd.f32 %v506_v61, %v504_v62 }
 0x166   :  { %v327_v43 = vrot.slane %v324_v36, 7  ;;  %v461_v48 = vpop.f32.mrf.mxu2  ;;  %v521_v6 = vadd.f32 %v507_v37, %v505_v63 }
 0x167   :  { %v490_v49 = vpop.f32.mrf.mxu3  ;;  %v462_v50 = vadd.f32 %v461_v48, %v820_v41 }
 0x168   :  { %v491_v52 = vadd.f32 %v490_v49, %v820_v41  ;;  %v329_v53 = vsel %vm328_vm1, %v323_v40, %v327_v43 }
 0x169   :  { %335 = vst.msk [vmem:[#allocation6] sm:$0x3] %vm848_vm2, %v329_v53  ;;  %v500_v38 = vmax.f32 %v462_v50, 0.0 }
 0x16a   :  { %v501_v60 = vmax.f32 %v491_v52, 0.0 }
 0x16b   :  { %v508_v1 = vmul.f32 %v500_v38, %v834_v59 }
 0x16c   :  { %v509_v2 = vmul.f32 %v501_v60, %v834_v59 }
 0x16d   :  { %v513_v9 = vadd.f32 %v512_v5, %v508_v1 }
 0x16e   :  { %v464_v41 = vpop.f32.mrf.mxu2  ;;  %v522_v58 = vadd.f32 %v521_v6, %v509_v2 }
 0x16f   :  { %v493_v0 = vpop.f32.mrf.mxu3  ;;  %v465_v3 = vadd.f32 %v464_v41, %v822_v42 }
 0x170   :  { %v494_v4 = vadd.f32 %v493_v0, %v822_v42 }
 0x171   :  { %v502_v7 = vmax.f32 %v465_v3, 0.0 }
 0x172   :  { %v503_v8 = vmax.f32 %v494_v4, 0.0 }
 0x173   :  { %v510_v11 = vmul.f32 %v502_v7, %v844_v10 }
 0x174   :  { %v511_v51 = vmul.f32 %v503_v8, %v844_v10 }
 0x175   :  { %v514_v12 = vadd.f32 %v513_v9, %v510_v11 }
 0x176   :  { %v523_v13 = vadd.f32 %v522_v58, %v511_v51 }
 0x177   :  { %v515_v14 = vrot.slane %v514_v12, 4 }
 0x178   :  { %v524_v15 = vrot.slane %v523_v13, 4 }
 0x179   :  { %v516_v16 = vadd.f32 %v515_v14, %v514_v12 }
 0x17a   :  { %v525_v59 = vadd.f32 %v524_v15, %v523_v13 }
 0x17b   :  { %v517_v17 = vrot.slane %v516_v16, 2 }
 0x17c   :  { %v526_v18 = vrot.slane %v525_v59, 2 }
 0x17d   :  { %v518_v19 = vadd.f32 %v517_v17, %v516_v16 }
 0x17e   :  { %v527_v42 = vadd.f32 %v526_v18, %v525_v59 }
 0x17f   :  { %v519_v20 = vrot.slane %v518_v19, 1 }
 0x180   :  { %v528_v21 = vrot.slane %v527_v42, 1 }
 0x181   :  { %v520_v22 = vadd.f32 %v519_v20, %v518_v19 }
 0x182   :  { %v529_v23 = vadd.f32 %v528_v21, %v527_v42 }
 0x183   :  { %v530_v24 = vadd.f32 %v520_v22, %v322_v33 }
 0x184   :  { %v531_v10 = vadd.f32 %v529_v23, %v322_v33 }
 0x186   :  { %v534_v25 = vrot.slane %v531_v10, 7 }
 0x188   :  { %v535_v26 = vsel %vm328_vm1, %v530_v24, %v534_v25 }
 0x189   :  { %539 = vst.msk [vmem:[#allocation6 + $0x2] sm:$0x3] %vm848_vm2, %v535_v26 }
 0x18a   :  { %552 = dma.vmem_to_hbm [thread:$0]  %s545_s27, 64, %s547_s30, [#allocation5], %s664_s8, %s664_s8, %s665_s9  }
 0x18b   :  { %657 = dma.done.wait [#allocation5], 64  }
 0x18c   :  { %658 = vsyncadd [#allocation5], 4294967232 }
 0x18d   :  { %557 = vsyncpa [#allocation4], 1 }
 0x18e   :  { %558 = vsyncpa [#allocation5], 1 }

</bundles_post_ra>
